<compile_context>
chip_gen: v7x
topology: tpu7x:2x2x1
jax: 0.10.0
libtpu: 0.0.40
codegen_flags: <defaults>
</compile_context>

<pallas_src>
import functools

import jax
import jax.numpy as jnp
from jax import lax
from jax.experimental import pallas as pl
from jax.experimental.pallas import tpu as pltpu


# ----------------------------- Pallas kernel -----------------------------
def session_kernel(emb_ref,      # (Tc, Bblk, D)  bf16 time-chunk of embedded sequence
                   wih1_ref,     # (D,  4Hp)      bf16 lstm_head input weights (gate-padded, transposed)
                   whh1_ref,     # (Hp, 4Hp)      bf16 lstm_head recurrent weights
                   b1_ref,       # (1,  4Hp)      f32  b_ih + b_hh of lstm_head (gate-padded)
                   wfc_ref,      # (Hp, Hp)       bf16 fc weight (transposed, padded)
                   bfc_ref,      # (1,  Hp)       f32  fc bias
                   wih2_ref,     # (Hp, 4Hp)      bf16 lstm_hidden input weights
                   b2_ref,       # (1,  4Hp)      f32  b_ih + b_hh of lstm_hidden
                   wout_ref,     # (Hp, Op)       bf16 out weight (transposed, padded)
                   bout_ref,     # (1,  Op)       f32  out bias
                   out_ref,      # (Bblk, Op)     f32  output block
                   h_sc, c_sc,   # (Bblk, Hp)     f32  VMEM scratch: hidden / cell state
                   *, seq_len, masked):
    t_blk = pl.program_id(1)
    n_t = pl.num_programs(1)
    Tc, Bblk, D = emb_ref.shape
    Hp = h_sc.shape[1]

    def sigmoid(x):
        # tanh identity: one EUP push instead of exp + reciprocal.
        return 0.5 * jnp.tanh(0.5 * x) + 0.5

    @pl.when(t_blk == 0)
    def _init():
        h_sc[...] = jnp.zeros_like(h_sc)
        c_sc[...] = jnp.zeros_like(c_sc)

    # Hoist constant weight loads out of the recurrence.
    wih1 = wih1_ref[...]
    whh1 = whh1_ref[...]
    b1 = b1_ref[...]

    # ---- lstm_head recurrence; h/c carried in vregs, input projection un-hoisted ----
    def step(t, carry):
        h_prev, c_prev = carry
        x_t = emb_ref[t]                                           # (Bblk, D) bf16
        gates = (jnp.dot(x_t, wih1, preferred_element_type=jnp.float32)
                 + jnp.dot(h_prev.astype(jnp.bfloat16), whh1,
                           preferred_element_type=jnp.float32)
                 + b1)                                             # (Bblk, 4Hp) f32
        # Sequenced gate consumption (f first, then i*g, then o) keeps fewer
        # (Bblk, Hp) f32 tiles live at once.
        c_new = sigmoid(gates[:, 1 * Hp:2 * Hp]) * c_prev
        c_new = c_new + sigmoid(gates[:, 0 * Hp:1 * Hp]) * jnp.tanh(gates[:, 2 * Hp:3 * Hp])
        h_new = sigmoid(gates[:, 3 * Hp:4 * Hp]) * jnp.tanh(c_new)
        if masked:
            # Padded time steps must not update state (zero-input LSTM steps are not
            # identity), so keep the previous h/c on invalid steps.
            valid = (t_blk * Tc + t) < seq_len
            h_new = jnp.where(valid, h_new, h_prev)
            c_new = jnp.where(valid, c_new, c_prev)
        return h_new, c_new

    unroll = next(u for u in (8, 4, 2, 1) if Tc % u == 0)
    h_fin, c_fin = lax.fori_loop(0, Tc, step, (h_sc[...], c_sc[...]), unroll=unroll)
    h_sc[...] = h_fin
    c_sc[...] = c_fin

    # ---- finalize on the last time chunk: fc -> lstm_hidden (one step) -> out ----
    @pl.when(t_blk == n_t - 1)
    def _finalize():
        fc_out = (jnp.dot(h_fin.astype(jnp.bfloat16), wfc_ref[...],
                          preferred_element_type=jnp.float32) + bfc_ref[...])
        gates2 = (jnp.dot(fc_out.astype(jnp.bfloat16), wih2_ref[...],
                          preferred_element_type=jnp.float32) + b2_ref[...])
        i2 = sigmoid(gates2[:, 0 * Hp:1 * Hp])
        g2 = jnp.tanh(gates2[:, 2 * Hp:3 * Hp])
        o2 = sigmoid(gates2[:, 3 * Hp:4 * Hp])
        h2 = o2 * jnp.tanh(i2 * g2)   # forget/c_prev and Whh2/h_prev terms vanish (zero init)
        out_ref[...] = (jnp.dot(h2.astype(jnp.bfloat16), wout_ref[...],
                                preferred_element_type=jnp.float32)
                        + bout_ref[...])


# --------------------------- helpers (host side) ---------------------------
def _round_up(x, m):
    return ((x + m - 1) // m) * m


def _vmem_capacity_bytes():
    try:
        return int(pltpu.get_tpu_info().vmem_capacity_bytes)
    except Exception:
        return 64 * 1024 * 1024          # conservative fallback (v7x per-TC VMEM)


def _gate_pad_t(w, H, Hp):
    """PyTorch-layout (4H, In) LSTM weight -> (In, 4Hp) transposed, each gate padded to Hp."""
    In = w.shape[1]
    out = jnp.zeros((In, 4 * Hp), jnp.float32)
    for k in range(4):
        out = out.at[:, k * Hp:k * Hp + H].set(w[k * H:(k + 1) * H, :].T)
    return out


def _gate_pad_bias(b, H, Hp):
    out = jnp.zeros((1, 4 * Hp), jnp.float32)
    for k in range(4):
        out = out.at[0, k * Hp:k * Hp + H].set(b[k * H:(k + 1) * H])
    return out


# ------------------------------ wrapper ------------------------------
def session_forward(x, params, *, time_chunk=None):
    """x: (B, T, F) int32 indices. Returns (B, out_size) f32."""
    emb_tables = params["emb"]
    F = len(emb_tables)
    B, T, _ = x.shape
    E = emb_tables[0].shape[1]
    D = E * F
    H = params["whh1"].shape[1]
    O = params["wout"].shape[0]
    assert D == H, "SessionModel only type-checks when embedding_dim*F == hidden_size"

    LANE, SUB_B = 128, 16
    Hp = _round_up(H, LANE)                       # lane-aligned gate width
    Op = _round_up(O, LANE)                       # lane-dense output store

    # ---- batch tiling: always >= 2 parallel blocks so both v7x TensorCores get work ----
    Bp0 = _round_up(B, SUB_B)
    nB = max(2, pl.cdiv(Bp0, 128))
    Bblk = _round_up(pl.cdiv(Bp0, nB), SUB_B)
    Bp = nB * Bblk

    # ---- weights: (in, out) layout, per-gate padded to Hp, matmul operands in bf16 ----
    wih1 = _gate_pad_t(params["wih1"], H, Hp).astype(jnp.bfloat16)                 # (D, 4Hp)
    whh1 = jnp.pad(_gate_pad_t(params["whh1"], H, Hp),
                   ((0, Hp - H), (0, 0))).astype(jnp.bfloat16)                     # (Hp, 4Hp)
    b1 = _gate_pad_bias(params["bih1"] + params["bhh1"], H, Hp)                    # (1, 4Hp)
    wfc = jnp.zeros((Hp, Hp), jnp.float32).at[:D, :H].set(
        params["wfc"].T).astype(jnp.bfloat16)                                      # (Hp, Hp)
    bfc = jnp.zeros((1, Hp), jnp.float32).at[0, :H].set(params["bfc"])             # (1, Hp)
    wih2 = jnp.pad(_gate_pad_t(params["wih2"], H, Hp),
                   ((0, Hp - H), (0, 0))).astype(jnp.bfloat16)                     # (Hp, 4Hp)
    b2 = _gate_pad_bias(params["bih2"] + params["bhh2"], H, Hp)                    # (1, 4Hp)
    wout = jnp.zeros((Hp, Op), jnp.float32).at[:H, :O].set(
        params["wout"].T).astype(jnp.bfloat16)                                     # (Hp, Op)
    bout = jnp.zeros((1, Op), jnp.float32).at[0, :O].set(params["bout"])           # (1, Op)

    weights = (wih1, whh1, b1, wfc, bfc, wih2, b2, wout, bout)

    # ---- generation-aware VMEM budget and time-chunk size (no xp slab any more) ----
    vmem_cap = _vmem_capacity_bytes()
    vmem_limit = vmem_cap * 3 // 4
    bytes_fixed = (2 * sum(int(w.size) * w.dtype.itemsize for w in weights)   # double-buffered
                   + 2 * Bblk * Hp * 4                                        # h, c scratch
                   + 2 * Bblk * Op * 4)                                       # output block (x2)
    per_t = 2 * Bblk * D * 2            # double-buffered bf16 (1, Bblk, D) time slice
    if time_chunk is None:
        budget = max(per_t, vmem_limit - bytes_fixed - (4 << 20))
        Tc = int(max(1, min(T, 256, budget // per_t)))
    else:
        Tc = int(time_chunk)
    nT = pl.cdiv(T, Tc)
    T_pad = nT * Tc
    vmem_limit = int(min(max(vmem_limit, bytes_fixed + per_t * Tc + (2 << 20)), vmem_cap))

    # ---- embedding gather, built time-major directly (no big-slab transpose) ----
    x_tm = jnp.transpose(x, (1, 0, 2))                             # (T, B, F) int32, tiny
    emb_tm = jnp.concatenate(
        [jnp.take(emb_tables[i], x_tm[:, :, i], axis=0) for i in range(F)],
        axis=-1)                                                   # (T, B, D) f32
    emb_tm = jnp.pad(
        emb_tm, ((0, T_pad - T), (0, Bp - B), (0, 0))).astype(jnp.bfloat16)

    kernel = functools.partial(session_kernel, seq_len=T, masked=(T_pad != T))

    def full(a):
        return pl.BlockSpec(a.shape, lambda b, t, n=a.ndim: (0,) * n)
    # TODO(synk): mark constant-index weight specs with pipeline_mode=pl.Buffered(1)
    # (single buffer) once that path is confirmed supported for top-level pallas_call.

    grid_spec = pltpu.PrefetchScalarGridSpec(
        num_scalar_prefetch=0,
        grid=(nB, nT),
        in_specs=[
            pl.BlockSpec((Tc, Bblk, D), lambda b, t: (t, b, 0)),   # streamed time chunks
            full(wih1), full(whh1), full(b1), full(wfc), full(bfc),
            full(wih2), full(b2), full(wout), full(bout),
        ],
        out_specs=pl.BlockSpec((Bblk, Op), lambda b, t: (b, 0)),
        scratch_shapes=[
            pltpu.VMEM((Bblk, Hp), jnp.float32),        # h
            pltpu.VMEM((Bblk, Hp), jnp.float32),        # c
        ],
    )

    out = pl.pallas_call(
        kernel,
        out_shape=jax.ShapeDtypeStruct((Bp, Op), jnp.float32),
        grid_spec=grid_spec,
        compiler_params=pltpu.CompilerParams(
            dimension_semantics=("parallel", "arbitrary"),
            vmem_limit_bytes=vmem_limit),
    )(emb_tm, *weights)

    return out[:B, :O]


# -------------------------- pure-JAX reference --------------------------
def reference_forward(x, params):
    emb_tables = params["emb"]
    embedded = jnp.concatenate(
        [emb_tables[i][x[:, :, i]] for i in range(len(emb_tables))], axis=-1
    ).astype(jnp.float32)                                          # (B, T, D)
    B, T, D = embedded.shape
    H = params["whh1"].shape[1]

    def cell(h, c, x_t, wih, whh, bih, bhh):
        gates = x_t @ wih.T + bih + h @ whh.T + bhh
        i, f, g, o = jnp.split(gates, 4, axis=-1)
        c = jax.nn.sigmoid(f) * c + jax.nn.sigmoid(i) * jnp.tanh(g)
        h = jax.nn.sigmoid(o) * jnp.tanh(c)
        return h, c

    def scan_step(carry, x_t):
        h, c = carry
        h, c = cell(h, c, x_t,
                    params["wih1"], params["whh1"],
                    params["bih1"], params["bhh1"])
        return (h, c), None

    h0 = jnp.zeros((B, H), jnp.float32)
    (h_last, _), _ = lax.scan(scan_step, (h0, h0),
                              jnp.transpose(embedded, (1, 0, 2)))
    fc_out = h_last @ params["wfc"].T + params["bfc"]
    h2, _ = cell(jnp.zeros((B, H), jnp.float32),
                 jnp.zeros((B, H), jnp.float32),
                 fc_out,
                 params["wih2"], params["whh2"],
                 params["bih2"], params["bhh2"])
    return h2 @ params["wout"].T + params["bout"]


# ------------------------------ params ------------------------------
def init_params(key, feature_sizes, embedding_dim, hidden_size, out_size):
    D = embedding_dim * len(feature_sizes)
    H = hidden_size
    keys = jax.random.split(key, 16)
    k = iter(keys)
    u = lambda kk, shape, scale: jax.random.uniform(
        kk, shape, jnp.float32, -scale, scale)
    s = 1.0 / jnp.sqrt(H)
    params = {
        "emb": [jax.random.normal(next(k), (fs, embedding_dim), jnp.float32) * 0.1
                for fs in feature_sizes],
        "wih1": u(next(k), (4 * H, D), s), "whh1": u(next(k), (4 * H, H), s),
        "bih1": u(next(k), (4 * H,), s),   "bhh1": u(next(k), (4 * H,), s),
        "wfc": u(next(k), (H, D), s),      "bfc": u(next(k), (H,), s),
        "wih2": u(next(k), (4 * H, H), s), "whh2": u(next(k), (4 * H, H), s),
        "bih2": u(next(k), (4 * H,), s),   "bhh2": u(next(k), (4 * H,), s),
        "wout": u(next(k), (out_size, H), s), "bout": u(next(k), (out_size,), s),
    }
    return params


if __name__ == "__main__":
    # Small shapes: B=2, T=8, 4 categorical features, E=8, H=32 (D = 4*8 = 32 = H).
    feature_sizes = [11, 7, 13, 5]
    embedding_dim = 8
    hidden_size = 32
    out_size = 1
    B, T = 2, 8

    root = jax.random.PRNGKey(0)
    kx, kp = jax.random.split(root)
    params = init_params(kp, feature_sizes, embedding_dim, hidden_size, out_size)

    cols = [jax.random.randint(jax.random.fold_in(kx, i), (B, T, 1), 0, fs)
            for i, fs in enumerate(feature_sizes)]
    x = jnp.concatenate(cols, axis=-1).astype(jnp.int32)           # (B, T, F)

    # time_chunk=3 forces multiple streamed chunks AND the ragged-T mask path (T_pad=9).
    fwd = jax.jit(functools.partial(session_forward, time_chunk=3))
    out = jax.block_until_ready(fwd(x, params))

    ref = jax.block_until_ready(reference_forward(x, params))
    assert out.shape == (B, out_size), out.shape
    # bf16 matmul operands (f32 accumulation) -> slightly looser tolerance vs f32 ref.
    err = float(jnp.max(jnp.abs(out - ref)))
    assert jnp.allclose(out, ref, atol=2e-2, rtol=2e-2), (err, out, ref)

    print("KERNEL_OK")
</pallas_src>

<mosaic_0001>
module attributes {stable_mosaic.version = 11 : i64} {
  func.func @session_kernel(%arg0: i32, %arg1: i32, %arg2: memref<3x16x32xbf16, #tpu.memory_space<vmem>>, %arg3: memref<32x512xbf16, #tpu.memory_space<vmem>>, %arg4: memref<128x512xbf16, #tpu.memory_space<vmem>>, %arg5: memref<1x512xf32, #tpu.memory_space<vmem>>, %arg6: memref<128x128xbf16, #tpu.memory_space<vmem>>, %arg7: memref<1x128xf32, #tpu.memory_space<vmem>>, %arg8: memref<128x512xbf16, #tpu.memory_space<vmem>>, %arg9: memref<1x512xf32, #tpu.memory_space<vmem>>, %arg10: memref<128x128xbf16, #tpu.memory_space<vmem>>, %arg11: memref<1x128xf32, #tpu.memory_space<vmem>>, %arg12: memref<16x128xf32, #tpu.memory_space<vmem>>, %arg13: memref<16x128xf32, #tpu.memory_space<vmem>>, %arg14: memref<16x128xf32, #tpu.memory_space<vmem>>) attributes {dimension_semantics = [#tpu.dimension_semantics<parallel>, #tpu.dimension_semantics<arbitrary>], iteration_bounds = array<i64: 2, 3>, scalar_prefetch = 0 : i64, scratch_operands = 2 : i64, tpu.core_type = #tpu.core_type<tc>, window_params = [{transform_indices = @transform_0, window_bounds = array<i64: 3, 16, 32>}, {pipeline_mode = #tpu.pipeline_mode<synchronous>, transform_indices = @transform_1, window_bounds = array<i64: 32, 512>}, {pipeline_mode = #tpu.pipeline_mode<synchronous>, transform_indices = @transform_2, window_bounds = array<i64: 128, 512>}, {pipeline_mode = #tpu.pipeline_mode<synchronous>, transform_indices = @transform_3, window_bounds = array<i64: 1, 512>}, {pipeline_mode = #tpu.pipeline_mode<synchronous>, transform_indices = @transform_4, window_bounds = array<i64: 128, 128>}, {pipeline_mode = #tpu.pipeline_mode<synchronous>, transform_indices = @transform_5, window_bounds = array<i64: 1, 128>}, {pipeline_mode = #tpu.pipeline_mode<synchronous>, transform_indices = @transform_6, window_bounds = array<i64: 128, 512>}, {pipeline_mode = #tpu.pipeline_mode<synchronous>, transform_indices = @transform_7, window_bounds = array<i64: 1, 512>}, {pipeline_mode = #tpu.pipeline_mode<synchronous>, transform_indices = @transform_8, window_bounds = array<i64: 128, 128>}, {pipeline_mode = #tpu.pipeline_mode<synchronous>, transform_indices = @transform_9, window_bounds = array<i64: 1, 128>}, {transform_indices = @transform_10, window_bounds = array<i64: 16, 128>}]} {
    %c0_i32 = arith.constant 0 : i32
    %0 = arith.cmpi eq, %arg1, %c0_i32 : i32
    %1 = arith.extui %0 : i1 to i32
    %c0_i32_0 = arith.constant 0 : i32
    %2 = arith.cmpi ne, %1, %c0_i32_0 : i32
    scf.if %2 {
      %cst = arith.constant 0.000000e+00 : f32
      %15 = vector.broadcast %cst : f32 to vector<16x128xf32>
      %c0_17 = arith.constant 0 : index
      %c0_18 = arith.constant 0 : index
      %16 = vector.load %arg13[%c0_17, %c0_18] : memref<16x128xf32, #tpu.memory_space<vmem>>, vector<16x128xf32>
      tpu.vector_store %arg13[%c0_17, %c0_18], %15 {strides = array<i32>} : memref<16x128xf32, #tpu.memory_space<vmem>>, vector<16x128xf32>,
      %cst_19 = arith.constant 0.000000e+00 : f32
      %17 = vector.broadcast %cst_19 : f32 to vector<16x128xf32>
      %c0_20 = arith.constant 0 : index
      %c0_21 = arith.constant 0 : index
      %18 = vector.load %arg14[%c0_20, %c0_21] : memref<16x128xf32, #tpu.memory_space<vmem>>, vector<16x128xf32>
      tpu.vector_store %arg14[%c0_20, %c0_21], %17 {strides = array<i32>} : memref<16x128xf32, #tpu.memory_space<vmem>>, vector<16x128xf32>,
    } else {
    }
    %c0 = arith.constant 0 : index
    %c0_1 = arith.constant 0 : index
    %3 = vector.load %arg3[%c0, %c0_1] : memref<32x512xbf16, #tpu.memory_space<vmem>>, vector<32x512xbf16>
    %c0_2 = arith.constant 0 : index
    %c0_3 = arith.constant 0 : index
    %4 = vector.load %arg4[%c0_2, %c0_3] : memref<128x512xbf16, #tpu.memory_space<vmem>>, vector<128x512xbf16>
    %c0_4 = arith.constant 0 : index
    %c0_5 = arith.constant 0 : index
    %5 = vector.load %arg5[%c0_4, %c0_5] : memref<1x512xf32, #tpu.memory_space<vmem>>, vector<1x512xf32>
    %c0_6 = arith.constant 0 : index
    %c0_7 = arith.constant 0 : index
    %6 = vector.load %arg13[%c0_6, %c0_7] : memref<16x128xf32, #tpu.memory_space<vmem>>, vector<16x128xf32>
    %c0_8 = arith.constant 0 : index
    %c0_9 = arith.constant 0 : index
    %7 = vector.load %arg14[%c0_8, %c0_9] : memref<16x128xf32, #tpu.memory_space<vmem>>, vector<16x128xf32>
    %c0_i32_10 = arith.constant 0 : i32
    %c3_i32 = arith.constant 3 : i32
    %8 = arith.addi %c0_i32_10, %c3_i32 : i32
    %c1_i32 = arith.constant 1 : i32
    %9:2 = scf.for %arg15 = %c0_i32_10 to %8 step %c1_i32 iter_args(%arg16 = %6, %arg17 = %7) -> (vector<16x128xf32>, vector<16x128xf32>)  : i32 {
      %15 = arith.index_cast %arg15 : i32 to index
      %c0_17 = arith.constant 0 : index
      %c0_18 = arith.constant 0 : index
      %16 = vector.load %arg2[%15, %c0_17, %c0_18] : memref<3x16x32xbf16, #tpu.memory_space<vmem>>, vector<1x16x32xbf16>
      %17 = vector.shape_cast %16 : vector<1x16x32xbf16> to vector<16x32xbf16>
      %cst = arith.constant dense<0.000000e+00> : vector<16x512xf32>
      %18 = tpu.matmul %17, %3, %cst {dimension_numbers = #tpu.dot_dimension_numbers<[1], [0], [0], [1], [0, 0, 1, 1], [], []>} : vector<16x32xbf16>, vector<32x512xbf16>, vector<16x512xf32> -> vector<16x512xf32>
      %19 = arith.truncf %arg16 : vector<16x128xf32> to vector<16x128xbf16>
      %cst_19 = arith.constant dense<0.000000e+00> : vector<16x512xf32>
      %20 = tpu.matmul %19, %4, %cst_19 {dimension_numbers = #tpu.dot_dimension_numbers<[1], [0], [0], [1], [0, 0, 1, 1], [], []>} : vector<16x128xbf16>, vector<128x512xbf16>, vector<16x512xf32> -> vector<16x512xf32>
      %21 = arith.addf %18, %20 : vector<16x512xf32>
      %22 = vector.broadcast %5 : vector<1x512xf32> to vector<16x512xf32>
      %23 = arith.addf %21, %22 : vector<16x512xf32>
      %24 = vector.extract_strided_slice %23 {offsets = [0, 128], sizes = [16, 128], strides = [1, 1]} : vector<16x512xf32> to vector<16x128xf32>
      %cst_20 = arith.constant 5.000000e-01 : f32
      %25 = vector.broadcast %cst_20 : f32 to vector<16x128xf32>
      %26 = arith.mulf %25, %24 : vector<16x128xf32>
      %27 = math.tanh %26 : vector<16x128xf32>
      %cst_21 = arith.constant 5.000000e-01 : f32
      %28 = vector.broadcast %cst_21 : f32 to vector<16x128xf32>
      %29 = arith.mulf %28, %27 : vector<16x128xf32>
      %cst_22 = arith.constant 5.000000e-01 : f32
      %30 = vector.broadcast %cst_22 : f32 to vector<16x128xf32>
      %31 = arith.addf %29, %30 : vector<16x128xf32>
      %32 = arith.mulf %31, %arg17 : vector<16x128xf32>
      %33 = vector.extract_strided_slice %23 {offsets = [0, 0], sizes = [16, 128], strides = [1, 1]} : vector<16x512xf32> to vector<16x128xf32>
      %cst_23 = arith.constant 5.000000e-01 : f32
      %34 = vector.broadcast %cst_23 : f32 to vector<16x128xf32>
      %35 = arith.mulf %34, %33 : vector<16x128xf32>
      %36 = math.tanh %35 : vector<16x128xf32>
      %cst_24 = arith.constant 5.000000e-01 : f32
      %37 = vector.broadcast %cst_24 : f32 to vector<16x128xf32>
      %38 = arith.mulf %37, %36 : vector<16x128xf32>
      %cst_25 = arith.constant 5.000000e-01 : f32
      %39 = vector.broadcast %cst_25 : f32 to vector<16x128xf32>
      %40 = arith.addf %38, %39 : vector<16x128xf32>
      %41 = vector.extract_strided_slice %23 {offsets = [0, 256], sizes = [16, 128], strides = [1, 1]} : vector<16x512xf32> to vector<16x128xf32>
      %42 = math.tanh %41 : vector<16x128xf32>
      %43 = arith.mulf %40, %42 : vector<16x128xf32>
      %44 = arith.addf %32, %43 : vector<16x128xf32>
      %45 = vector.extract_strided_slice %23 {offsets = [0, 384], sizes = [16, 128], strides = [1, 1]} : vector<16x512xf32> to vector<16x128xf32>
      %cst_26 = arith.constant 5.000000e-01 : f32
      %46 = vector.broadcast %cst_26 : f32 to vector<16x128xf32>
      %47 = arith.mulf %46, %45 : vector<16x128xf32>
      %48 = math.tanh %47 : vector<16x128xf32>
      %cst_27 = arith.constant 5.000000e-01 : f32
      %49 = vector.broadcast %cst_27 : f32 to vector<16x128xf32>
      %50 = arith.mulf %49, %48 : vector<16x128xf32>
      %cst_28 = arith.constant 5.000000e-01 : f32
      %51 = vector.broadcast %cst_28 : f32 to vector<16x128xf32>
      %52 = arith.addf %50, %51 : vector<16x128xf32>
      %53 = math.tanh %44 : vector<16x128xf32>
      %54 = arith.mulf %52, %53 : vector<16x128xf32>
      %c3_i32_29 = arith.constant 3 : i32
      %55 = arith.muli %arg1, %c3_i32_29 : i32
      %56 = arith.addi %55, %arg15 : i32
      %c8_i32 = arith.constant 8 : i32
      %57 = arith.cmpi slt, %56, %c8_i32 : i32
      %58 = arith.select %57, %54, %arg16 : vector<16x128xf32>
      %59 = arith.select %57, %44, %arg17 : vector<16x128xf32>
      scf.yield %58, %59 : vector<16x128xf32>, vector<16x128xf32>
    }
    %c3_i32_11 = arith.constant 3 : i32
    %c0_12 = arith.constant 0 : index
    %c0_13 = arith.constant 0 : index
    %10 = vector.load %arg13[%c0_12, %c0_13] : memref<16x128xf32, #tpu.memory_space<vmem>>, vector<16x128xf32>
    tpu.vector_store %arg13[%c0_12, %c0_13], %9#0 {strides = array<i32>} : memref<16x128xf32, #tpu.memory_space<vmem>>, vector<16x128xf32>,
    %c0_14 = arith.constant 0 : index
    %c0_15 = arith.constant 0 : index
    %11 = vector.load %arg14[%c0_14, %c0_15] : memref<16x128xf32, #tpu.memory_space<vmem>>, vector<16x128xf32>
    tpu.vector_store %arg14[%c0_14, %c0_15], %9#1 {strides = array<i32>} : memref<16x128xf32, #tpu.memory_space<vmem>>, vector<16x128xf32>,
    %c2_i32 = arith.constant 2 : i32
    %12 = arith.cmpi eq, %arg1, %c2_i32 : i32
    %13 = arith.extui %12 : i1 to i32
    %c0_i32_16 = arith.constant 0 : i32
    %14 = arith.cmpi ne, %13, %c0_i32_16 : i32
    scf.if %14 {
      %15 = arith.truncf %9#0 : vector<16x128xf32> to vector<16x128xbf16>
      %c0_17 = arith.constant 0 : index
      %c0_18 = arith.constant 0 : index
      %16 = vector.load %arg6[%c0_17, %c0_18] : memref<128x128xbf16, #tpu.memory_space<vmem>>, vector<128x128xbf16>
      %cst = arith.constant dense<0.000000e+00> : vector<16x128xf32>
      %17 = tpu.matmul %15, %16, %cst {dimension_numbers = #tpu.dot_dimension_numbers<[1], [0], [0], [1], [0, 0, 1, 1], [], []>} : vector<16x128xbf16>, vector<128x128xbf16>, vector<16x128xf32> -> vector<16x128xf32>
      %c0_19 = arith.constant 0 : index
      %c0_20 = arith.constant 0 : index
      %18 = vector.load %arg7[%c0_19, %c0_20] : memref<1x128xf32, #tpu.memory_space<vmem>>, vector<1x128xf32>
      %19 = vector.broadcast %18 : vector<1x128xf32> to vector<16x128xf32>
      %20 = arith.addf %17, %19 : vector<16x128xf32>
      %21 = arith.truncf %20 : vector<16x128xf32> to vector<16x128xbf16>
      %c0_21 = arith.constant 0 : index
      %c0_22 = arith.constant 0 : index
      %22 = vector.load %arg8[%c0_21, %c0_22] : memref<128x512xbf16, #tpu.memory_space<vmem>>, vector<128x512xbf16>
      %cst_23 = arith.constant dense<0.000000e+00> : vector<16x512xf32>
      %23 = tpu.matmul %21, %22, %cst_23 {dimension_numbers = #tpu.dot_dimension_numbers<[1], [0], [0], [1], [0, 0, 1, 1], [], []>} : vector<16x128xbf16>, vector<128x512xbf16>, vector<16x512xf32> -> vector<16x512xf32>
      %c0_24 = arith.constant 0 : index
      %c0_25 = arith.constant 0 : index
      %24 = vector.load %arg9[%c0_24, %c0_25] : memref<1x512xf32, #tpu.memory_space<vmem>>, vector<1x512xf32>
      %25 = vector.broadcast %24 : vector<1x512xf32> to vector<16x512xf32>
      %26 = arith.addf %23, %25 : vector<16x512xf32>
      %27 = vector.extract_strided_slice %26 {offsets = [0, 0], sizes = [16, 128], strides = [1, 1]} : vector<16x512xf32> to vector<16x128xf32>
      %cst_26 = arith.constant 5.000000e-01 : f32
      %28 = vector.broadcast %cst_26 : f32 to vector<16x128xf32>
      %29 = arith.mulf %28, %27 : vector<16x128xf32>
      %30 = math.tanh %29 : vector<16x128xf32>
      %cst_27 = arith.constant 5.000000e-01 : f32
      %31 = vector.broadcast %cst_27 : f32 to vector<16x128xf32>
      %32 = arith.mulf %31, %30 : vector<16x128xf32>
      %cst_28 = arith.constant 5.000000e-01 : f32
      %33 = vector.broadcast %cst_28 : f32 to vector<16x128xf32>
      %34 = arith.addf %32, %33 : vector<16x128xf32>
      %35 = vector.extract_strided_slice %26 {offsets = [0, 256], sizes = [16, 128], strides = [1, 1]} : vector<16x512xf32> to vector<16x128xf32>
      %36 = math.tanh %35 : vector<16x128xf32>
      %37 = vector.extract_strided_slice %26 {offsets = [0, 384], sizes = [16, 128], strides = [1, 1]} : vector<16x512xf32> to vector<16x128xf32>
      %cst_29 = arith.constant 5.000000e-01 : f32
      %38 = vector.broadcast %cst_29 : f32 to vector<16x128xf32>
      %39 = arith.mulf %38, %37 : vector<16x128xf32>
      %40 = math.tanh %39 : vector<16x128xf32>
      %cst_30 = arith.constant 5.000000e-01 : f32
      %41 = vector.broadcast %cst_30 : f32 to vector<16x128xf32>
      %42 = arith.mulf %41, %40 : vector<16x128xf32>
      %cst_31 = arith.constant 5.000000e-01 : f32
      %43 = vector.broadcast %cst_31 : f32 to vector<16x128xf32>
      %44 = arith.addf %42, %43 : vector<16x128xf32>
      %45 = arith.mulf %34, %36 : vector<16x128xf32>
      %46 = math.tanh %45 : vector<16x128xf32>
      %47 = arith.mulf %44, %46 : vector<16x128xf32>
      %48 = arith.truncf %47 : vector<16x128xf32> to vector<16x128xbf16>
      %c0_32 = arith.constant 0 : index
      %c0_33 = arith.constant 0 : index
      %49 = vector.load %arg10[%c0_32, %c0_33] : memref<128x128xbf16, #tpu.memory_space<vmem>>, vector<128x128xbf16>
      %cst_34 = arith.constant dense<0.000000e+00> : vector<16x128xf32>
      %50 = tpu.matmul %48, %49, %cst_34 {dimension_numbers = #tpu.dot_dimension_numbers<[1], [0], [0], [1], [0, 0, 1, 1], [], []>} : vector<16x128xbf16>, vector<128x128xbf16>, vector<16x128xf32> -> vector<16x128xf32>
      %c0_35 = arith.constant 0 : index
      %c0_36 = arith.constant 0 : index
      %51 = vector.load %arg11[%c0_35, %c0_36] : memref<1x128xf32, #tpu.memory_space<vmem>>, vector<1x128xf32>
      %52 = vector.broadcast %51 : vector<1x128xf32> to vector<16x128xf32>
      %53 = arith.addf %50, %52 : vector<16x128xf32>
      %c0_37 = arith.constant 0 : index
      %c0_38 = arith.constant 0 : index
      %54 = vector.load %arg12[%c0_37, %c0_38] : memref<16x128xf32, #tpu.memory_space<vmem>>, vector<16x128xf32>
      tpu.vector_store %arg12[%c0_37, %c0_38], %53 {strides = array<i32>} : memref<16x128xf32, #tpu.memory_space<vmem>>, vector<16x128xf32>,
    } else {
    }
    return
  }
  func.func @transform_0(%arg0: i32, %arg1: i32) -> (i32, i32, i32) {
    %c0_i32 = arith.constant 0 : i32
    %c0_i32_0 = arith.constant 0 : i32
    return %arg1, %arg0, %c0_i32 : i32, i32, i32
  }
  func.func @transform_1(%arg0: i32, %arg1: i32) -> (i32, i32) {
    %c0_i32 = arith.constant 0 : i32
    %c0_i32_0 = arith.constant 0 : i32
    %c0_i32_1 = arith.constant 0 : i32
    return %c0_i32, %c0_i32_0 : i32, i32
  }
  func.func @transform_2(%arg0: i32, %arg1: i32) -> (i32, i32) {
    %c0_i32 = arith.constant 0 : i32
    %c0_i32_0 = arith.constant 0 : i32
    %c0_i32_1 = arith.constant 0 : i32
    return %c0_i32, %c0_i32_0 : i32, i32
  }
  func.func @transform_3(%arg0: i32, %arg1: i32) -> (i32, i32) {
    %c0_i32 = arith.constant 0 : i32
    %c0_i32_0 = arith.constant 0 : i32
    %c0_i32_1 = arith.constant 0 : i32
    return %c0_i32, %c0_i32_0 : i32, i32
  }
  func.func @transform_4(%arg0: i32, %arg1: i32) -> (i32, i32) {
    %c0_i32 = arith.constant 0 : i32
    %c0_i32_0 = arith.constant 0 : i32
    %c0_i32_1 = arith.constant 0 : i32
    return %c0_i32, %c0_i32_0 : i32, i32
  }
  func.func @transform_5(%arg0: i32, %arg1: i32) -> (i32, i32) {
    %c0_i32 = arith.constant 0 : i32
    %c0_i32_0 = arith.constant 0 : i32
    %c0_i32_1 = arith.constant 0 : i32
    return %c0_i32, %c0_i32_0 : i32, i32
  }
  func.func @transform_6(%arg0: i32, %arg1: i32) -> (i32, i32) {
    %c0_i32 = arith.constant 0 : i32
    %c0_i32_0 = arith.constant 0 : i32
    %c0_i32_1 = arith.constant 0 : i32
    return %c0_i32, %c0_i32_0 : i32, i32
  }
  func.func @transform_7(%arg0: i32, %arg1: i32) -> (i32, i32) {
    %c0_i32 = arith.constant 0 : i32
    %c0_i32_0 = arith.constant 0 : i32
    %c0_i32_1 = arith.constant 0 : i32
    return %c0_i32, %c0_i32_0 : i32, i32
  }
  func.func @transform_8(%arg0: i32, %arg1: i32) -> (i32, i32) {
    %c0_i32 = arith.constant 0 : i32
    %c0_i32_0 = arith.constant 0 : i32
    %c0_i32_1 = arith.constant 0 : i32
    return %c0_i32, %c0_i32_0 : i32, i32
  }
  func.func @transform_9(%arg0: i32, %arg1: i32) -> (i32, i32) {
    %c0_i32 = arith.constant 0 : i32
    %c0_i32_0 = arith.constant 0 : i32
    %c0_i32_1 = arith.constant 0 : i32
    return %c0_i32, %c0_i32_0 : i32, i32
  }
  func.func @transform_10(%arg0: i32, %arg1: i32) -> (i32, i32) {
    %c0_i32 = arith.constant 0 : i32
    %c0_i32_0 = arith.constant 0 : i32
    return %arg0, %c0_i32 : i32, i32
  }
}

</mosaic_0001>

<bundles_post_ra>
// kernel: session_forward.1
= control target key start
LH: loop header
LB: loop body
LE: loop exit
PB: predicated region body
PF: predicated region fallthrough
CT: control target
= control target key end

     0   :  { %s2155_s13 = smov 0   ;;  %s2157_s14 = smov 0   ;;  %s2810_s0 = inlined_call_operand.vmem [shape: bf16[9,32,32], index: 0, kind: input, shape index: {}]   ;;  %s2811_s1 = inlined_call_operand.vmem [shape: bf16[32,512], index: 1, kind: input, shape index: {}]   ;;  %s2812_s2 = inlined_call_operand.vmem [shape: bf16[128,512], index: 2, kind: input, shape index: {}]   ;;  %s2813_s3 = inlined_call_operand.vmem [shape: f32[1,512], index: 3, kind: input, shape index: {}]   ;;  %s2814_s4 = inlined_call_operand.vmem [shape: bf16[128,128], index: 4, kind: input, shape index: {}]   ;;  %s2815_s5 = inlined_call_operand.vmem [shape: f32[1,128], index: 5, kind: input, shape index: {}]   ;;  %s2816_s6 = inlined_call_operand.vmem [shape: bf16[128,512], index: 6, kind: input, shape index: {}]   ;;  %s2817_s7 = inlined_call_operand.vmem [shape: f32[1,512], index: 7, kind: input, shape index: {}]   ;;  %s2818_s8 = inlined_call_operand.vmem [shape: bf16[128,128], index: 8, kind: input, shape index: {}]   ;;  %s2819_s9 = inlined_call_operand.vmem [shape: f32[1,128], index: 9, kind: input, shape index: {}]   ;;  %s2820_s10 = inlined_call_operand.vmem [shape: f32[32,128], index: 10, kind: output, shape index: {}]  }
   0x1   :  { %s2159_s15 = smov 0   ;;  %s2161_s16 = smov 0  }
   0x2   :  { %s2163_s17 = smov 0   ;;  %s2165_s18 = smov 0  }
   0x3   :  { %s2167_s19 = smov 0  }
   0x4 LB: > { %s29_s20 = sadd.s32 1, %s2065_s17  ;;  %s32_s21 = sadd.s32 1, %s2069_s18  ;;  %s2073_s19 = sphi %s2167_s19, %s20_s19   ;;  %s2069_s18 = sphi %s2165_s18, %s2855_s18   ;;  %s2065_s17 = sphi %s2163_s17, %s2854_s17   ;;  %s2061_s16 = sphi %s2161_s16, %s2853_s16   ;;  %s2057_s15 = sphi %s2159_s15, %s2852_s15   ;;  %s2053_s14 = sphi %s2157_s14, %s2851_s14   ;;  %s2049_s13 = sphi %s2155_s13, %s2850_s13  }
   0x5   : > { %p30_p0 = scmp.ge.s32.totalorder %s29_s20, 3  ;;  %p48_p1 = scmp.ne.s32.totalorder %s2053_s14, %s2049_s13 }
   0x6   : > { %p49_p2 = scmp.eq.s32.totalorder %s2073_s19, 0  ;;  %s41_s25 = sadd.s32 1, %s2053_s14 }
   0x7   : > { %s2857_s20 = smov (%p30_p0, %s29_s20), 0  ;;  %s2859_s21 = smov (!%p30_p0, %s32_s21), %s2069_s18 }
   0x8   : > { %2829 = sst [smem:[#allocation5_spill]] %s2857_s20  ;;  %p50_p3 = por %p49_p2, %p48_p1 }
   0x9   : > { %p34_p4 = scmp.ge.s32.totalorder %s2859_s21, 2  ;;  %s36_s22 = ssub.s32 %s2065_s17, %s2857_s20 }
   0xa   : > { %p1621_p6 = scmp.ge.s32.totalorder %s2073_s19, 6 }
   0xb   : > { %s2861_s21 = smov (%p34_p4, %s2859_s21), 0 }
   0xc   : > { %2830 = sst [smem:[#allocation6_spill]] %s2861_s21  ;;  %s37_s23 = ssub.s32 %s2069_s18, %s2861_s21 }
   0xd   : > { %s38_s24 = sor.u32 %s37_s23, %s36_s22  ;;  %316 = sbr.rel (%p1621_p6) target bundleno = 30 (0x1e), region = 52 }
   0xe   : > { %p39_p5 = scmp.eq.s32.totalorder %s38_s24, 0 }
  0x10   : > { %s2206_s26 = scalar_select %p39_p5, %s2053_s14, %s41_s25  }
  0x14   : > { %319 = sbr.rel (!%p50_p3) target bundleno = 30 (0x1e), region = 56  ;;  %s321_s27 = sand.u32 (%p50_p3), 1, %s2053_s14  }
  0x15   : > { %s1795_s28 = smul.u32 (%p50_p3), 24, %s321_s27  ;;  %s1622_s29 = sshll.u32 (%p50_p3), %s2069_s18, 1 }
  0x16   : > { %s1727_s30 = smul.u32 (%p50_p3), 12, %s2065_s17 }
  0x17   : > { %s323_s23 = scalar_lea.vmem (%p50_p3), [#allocation4], %s1795_s28 }
  0x18   : > { %s327_s11 = sadd.s32 (%p50_p3), %s1727_s30, %s1622_s29 }
  0x19   : > { %s1624_s12 = sshll.u32 (%p50_p3), %s327_s11, 2 }
  0x1a   : > { %s329_s22 = scalar_lea.vmem (%p50_p3), %s2810_s0, %s1624_s12 }
  0x1b   : > { %v345_v0 = vld [vmem:[%s329_s22] sm:$0xff]   ;;  %v349_v1 = vld [vmem:[%s329_s22 + $0x10] sm:$0xff]  }
  0x1c   : > { %v353_v2 = vld [vmem:[%s329_s22 + $0x20] sm:$0xff]   ;;  %346 = vst [vmem:[%s323_s23] sm:$0xff] %v345_v0   ;;  %350 = vst [vmem:[%s323_s23 + $0x8] sm:$0xff] %v349_v1  }
  0x1d   : > { %354 = vst [vmem:[%s323_s23 + $0x10] sm:$0xff] %v353_v2  }
  0x1e PF: > { %p1625_p7 = scmp.ge.s32.totalorder %s2073_s19, 1  ;;  %p390_p8 = scmp.lt.s32.totalorder %s2073_s19, 7 }
  0x20   : > { %p391_p9 = pnand %p1625_p7, %p390_p8 }
  0x22   : > { %394 = sbr.rel (%p391_p9) target bundleno = 1087 (0x43f), region = 97 }
  0x29   : > { %s397_s24 = sand.u32 1, %s2049_s13   ;;  %s1626_s20 = sshll.u32 %s2061_s16, 1 }
  0x2a   : > { %s2219_s21 = smul.u32 24, %s397_s24  ;;  %p437_p10 = scmp.lt.s32.totalorder %s1626_s20, 3 }
  0x2b   : > { %p1628_p11 = scmp.ne.s32.totalorder %s2057_s15, 0 }
  0x2c   : > { %s2863_s20 = smov (!%p437_p10, %s1626_s20), 3  ;;  %s399_s30 = scalar_lea.vmem [#allocation4], %s2219_s21  ;;  %v2095_v3 = vmov (!%p1628_p11), 0.0  }
  0x2d   : > { %s1627_s25 = sshll.u32 %s2863_s20, 3  ;;  %446 = sbr.rel (%p1628_p11) target bundleno = 52 (0x34), region = 105  ;;  %447 = vst [vmem:[#allocation2] sm:$0xff] (!%p1628_p11), %v2095_v3  ;;  %448 = vst [vmem:[#allocation2 + $0x8] sm:$0xff] (!%p1628_p11), %v2095_v3 }
  0x2e   : > { %s2224_s29 = scalar_lea.vmem %s2820_s10, %s1627_s25  ;;  %449 = vst [vmem:[#allocation3] sm:$0xff] (!%p1628_p11), %v2095_v3  ;;  %450 = vst [vmem:[#allocation3 + $0x8] sm:$0xff] (!%p1628_p11), %v2095_v3 }
  0x34 PF: > { %v2231_v4 = vld [vmem:[%s2811_s1] sm:$0xff]  ;;  %v2236_v5 = vld [vmem:[%s2811_s1 + $0x8] sm:$0xff]  ;;  %v2241_v6 = vld [vmem:[%s2811_s1 + $0x10] sm:$0xff]  ;;  %s2441_s23 = smov 0  }
  0x35   : > { %2831 = vst [vmem:[#allocation7_spill] sm:$0xff] %v2231_v4  ;;  %2832 = vst [vmem:[#allocation8_spill] sm:$0xff] %v2236_v5  ;;  %v2246_v7 = vld [vmem:[%s2811_s1 + $0x18] sm:$0xff]  ;;  %v2251_v8 = vld [vmem:[%s2811_s1 + $0x20] sm:$0xff] }
  0x36   : > { %2833 = vst [vmem:[#allocation9_spill] sm:$0xff] %v2241_v6  ;;  %v2256_v9 = vld [vmem:[%s2811_s1 + $0x28] sm:$0xff]  ;;  %v2261_v10 = vld [vmem:[%s2811_s1 + $0x30] sm:$0xff]  ;;  %v2266_v11 = vld [vmem:[%s2811_s1 + $0x38] sm:$0xff] }
  0x37   : > { %v2271_v12 = vld [vmem:[%s2812_s2] sm:$0xff]  ;;  %v2276_v13 = vld [vmem:[%s2812_s2 + $0x8] sm:$0xff]  ;;  %v2281_v14 = vld [vmem:[%s2812_s2 + $0x10] sm:$0xff] }
  0x38   : > { %v2286_v15 = vld [vmem:[%s2812_s2 + $0x18] sm:$0xff]  ;;  %v2291_v16 = vld [vmem:[%s2812_s2 + $0x20] sm:$0xff]  ;;  %v2296_v17 = vld [vmem:[%s2812_s2 + $0x28] sm:$0xff] }
  0x39   : > { %v2301_v18 = vld [vmem:[%s2812_s2 + $0x30] sm:$0xff]  ;;  %v2306_v19 = vld [vmem:[%s2812_s2 + $0x38] sm:$0xff]  ;;  %v2311_v20 = vld [vmem:[%s2812_s2 + $0x40] sm:$0xff] }
  0x3a   : > { %v2316_v21 = vld [vmem:[%s2812_s2 + $0x48] sm:$0xff]  ;;  %v2321_v22 = vld [vmem:[%s2812_s2 + $0x50] sm:$0xff]  ;;  %v2326_v23 = vld [vmem:[%s2812_s2 + $0x58] sm:$0xff] }
  0x3b   : > { %v2331_v24 = vld [vmem:[%s2812_s2 + $0x60] sm:$0xff]  ;;  %v2336_v25 = vld [vmem:[%s2812_s2 + $0x68] sm:$0xff]  ;;  %v2341_v26 = vld [vmem:[%s2812_s2 + $0x70] sm:$0xff] }
  0x3c   : > { %v2346_v27 = vld [vmem:[%s2812_s2 + $0x78] sm:$0xff]  ;;  %v2351_v28 = vld [vmem:[%s2812_s2 + $0x80] sm:$0xff]  ;;  %v2356_v29 = vld [vmem:[%s2812_s2 + $0x88] sm:$0xff] }
  0x3d   : > { %v2361_v30 = vld [vmem:[%s2812_s2 + $0x90] sm:$0xff]  ;;  %v2366_v31 = vld [vmem:[%s2812_s2 + $0x98] sm:$0xff]  ;;  %v2371_v32 = vld [vmem:[%s2812_s2 + $0xa0] sm:$0xff] }
  0x3e   : > { %v2376_v33 = vld [vmem:[%s2812_s2 + $0xa8] sm:$0xff]  ;;  %v2381_v34 = vld [vmem:[%s2812_s2 + $0xb0] sm:$0xff]  ;;  %v2386_v35 = vld [vmem:[%s2812_s2 + $0xb8] sm:$0xff] }
  0x3f   : > { %v2391_v36 = vld [vmem:[%s2812_s2 + $0xc0] sm:$0xff]  ;;  %v2396_v37 = vld [vmem:[%s2812_s2 + $0xc8] sm:$0xff]  ;;  %v2401_v38 = vld [vmem:[%s2812_s2 + $0xd0] sm:$0xff] }
  0x40   : > { %v2406_v39 = vld [vmem:[%s2812_s2 + $0xd8] sm:$0xff]  ;;  %v2411_v40 = vld [vmem:[%s2812_s2 + $0xe0] sm:$0xff]  ;;  %v2416_v41 = vld [vmem:[%s2812_s2 + $0xe8] sm:$0xff] }
  0x41   : > { %v2421_v42 = vld [vmem:[%s2812_s2 + $0xf0] sm:$0xff]  ;;  %v2426_v43 = vld [vmem:[%s2812_s2 + $0xf8] sm:$0xff]  ;;  %v2431_v44 = vld [vmem:[%s2813_s3] sm:$0xf] }
  0x42   : > { %v492_v45 = vld [vmem:[#allocation2] sm:$0xff]   ;;  %v493_v46 = vld [vmem:[#allocation2 + $0x8] sm:$0xff]   ;;  %v494_v47 = vld [vmem:[#allocation3] sm:$0xff]  }
  0x43   : > { %v495_v48 = vld [vmem:[#allocation3 + $0x8] sm:$0xff]  }
  0x44 LB: >> { %v2834_v6 = vld [vmem:[#allocation9_spill] sm:$0xff]  ;;  %v2835_v5 = vld [vmem:[#allocation8_spill] sm:$0xff]  ;;  %v2836_v4 = vld [vmem:[#allocation7_spill] sm:$0xff]  ;;  %v1632_v49 = vcombine.high %v2271_v12, %v2281_v14  ;;  %v1634_v50 = vcombine.high %v2276_v13, %v2286_v15  ;;  %v1631_v51 = vcombine.low %v2271_v12, %v2281_v14  ;;  %v1633_v52 = vcombine.low %v2276_v13, %v2286_v15  ;;  %s1728_s24 = sshll.u32 %s2093_s23, 3  ;;  %s958_s25 = smul.u32 3, %s2057_s15  ;;  %v2085_v46 = vphi %v493_v46, %v2843_v46   ;;  %v2081_v47 = vphi %v494_v47, %v2842_v47   ;;  %v2077_v48 = vphi %v495_v48, %v2841_v48   ;;  %s2093_s23 = sphi %s2441_s23, %s501_s23   ;;  %v2089_v45 = vphi %v492_v45, %v2844_v45  }
  0x45   : >> { %v1636_v53 = vcombine.high %v2291_v16, %v2301_v18  ;;  %v1638_v54 = vcombine.high %v2296_v17, %v2306_v19  ;;  %v1635_v55 = vcombine.low %v2291_v16, %v2301_v18  ;;  %v1637_v56 = vcombine.low %v2296_v17, %v2306_v19  ;;  %s2477_s20 = scalar_lea.vmem %s399_s30, %s1728_s24 [#allocation4] }
  0x46   : >> { %672 = vmatprep.subr.bf16.mxu0 %v1632_v49  ;;  %715 = vmatprep.subr.bf16.mxu1 %v1634_v50  ;;  %v1640_v57 = vcombine.high %v2311_v20, %v2321_v22  ;;  %v1642_v58 = vcombine.high %v2316_v21, %v2326_v23  ;;  %v2096_v59 = vmov 0   ;;  %v1639_v60 = vcombine.low %v2311_v20, %v2321_v22  ;;  %s959_s27 = sadd.s32 %s2093_s23, %s958_s25  ;;  %s501_s23 = sadd.s32 1, %s2093_s23  }
  0x47   : >> { %673 = vmatpush1.bf16.msra.mxu0 %v1631_v51  ;;  %716 = vmatpush1.bf16.msra.mxu1 %v1633_v52  ;;  %v1641_v61 = vcombine.low %v2316_v21, %v2326_v23  ;;  %v1644_v62 = vcombine.high %v2331_v24, %v2341_v26  ;;  %v1646_v63 = vcombine.high %v2336_v25, %v2346_v27  ;;  %vm803_vm0 = vcmask 261120   ;;  %p960_p12 = scmp.lt.s32.totalorder %s959_s27, 8  ;;  %p498_p13 = scmp.ge.s32.totalorder %s501_s23, 3  }
  0x48   : >> { %674 = vmatprep.subr.bf16.mxu0 %v1636_v53  ;;  %717 = vmatprep.subr.bf16.mxu1 %v1638_v54  ;;  %v1643_v0 = vcombine.low %v2331_v24, %v2341_v26  ;;  %v1645_v1 = vcombine.low %v2336_v25, %v2346_v27  ;;  %v1648_v2 = vcombine.high %v2351_v28, %v2361_v30  ;;  %p1674_p0 = scmp.ne.s32.totalorder (%p498_p13), %s2057_s15, 2 }
  0x49   : >> { %704 = vmatprep.mubr.bf16.mxu0 %v2096_v59  ;;  %747 = vmatprep.mubr.bf16.mxu1 %v2096_v59  ;;  %v1650_v3 = vcombine.high %v2356_v29, %v2366_v31  ;;  %v1647_v49 = vcombine.low %v2351_v28, %v2361_v30  ;;  %v1649_v50 = vcombine.low %v2356_v29, %v2366_v31  ;;  %s961_s28 = scalar_select %p960_p12, 1, 0 }
  0x4a   : >> { %v1652_v51 = vcombine.high %v2371_v32, %v2381_v34  ;;  %v1654_v52 = vcombine.high %v2376_v33, %v2386_v35  ;;  %v1651_v53 = vcombine.low %v2371_v32, %v2381_v34  ;;  %v1653_v54 = vcombine.low %v2376_v33, %v2386_v35 }
  0x4b   : >> { %675 = vmatpush1.bf16.msra.mxu0 %v1635_v55  ;;  %718 = vmatpush1.bf16.msra.mxu1 %v1637_v56  ;;  %v1656_v55 = vcombine.high %v2391_v36, %v2401_v38  ;;  %v1658_v56 = vcombine.high %v2396_v37, %v2406_v39 }
  0x4c   : >> { %676 = vmatprep.subr.bf16.mxu0 %v1640_v57  ;;  %719 = vmatprep.subr.bf16.mxu1 %v1642_v58  ;;  %v1655_v57 = vcombine.low %v2391_v36, %v2401_v38  ;;  %v1657_v58 = vcombine.low %v2396_v37, %v2406_v39 }
  0x4f   : >> { %677 = vmatpush1.bf16.msra.mxu0 %v1639_v60  ;;  %720 = vmatpush1.bf16.msra.mxu1 %v1641_v61  ;;  %v1660_v60 = vcombine.high %v2411_v40, %v2421_v42  ;;  %v1662_v61 = vcombine.high %v2416_v41, %v2426_v43 }
  0x50   : >> { %678 = vmatprep.subr.bf16.mxu0 %v1644_v62  ;;  %721 = vmatprep.subr.bf16.mxu1 %v1646_v63  ;;  %v1659_v62 = vcombine.low %v2411_v40, %v2421_v42  ;;  %v1661_v63 = vcombine.low %v2416_v41, %v2426_v43 }
  0x53   : >> { %679 = vmatpush1.bf16.msra.mxu0 %v1643_v0  ;;  %722 = vmatpush1.bf16.msra.mxu1 %v1645_v1  ;;  %v1665_v0 = vcombine.high %v2836_v4, %v2834_v6  ;;  %v1667_v1 = vcombine.high %v2835_v5, %v2246_v7 }
  0x54   : >> { %680 = vmatprep.subr.bf16.mxu0 %v1648_v2  ;;  %723 = vmatprep.subr.bf16.mxu1 %v1650_v3  ;;  %v511_v2 = vpack.c.bf16 %v2085_v46, %v2089_v45  ;;  %v1664_v3 = vcombine.low %v2836_v4, %v2834_v6 }
  0x57   : >> { %681 = vmatpush1.bf16.msra.mxu0 %v1647_v49  ;;  %724 = vmatpush1.bf16.msra.mxu1 %v1649_v50  ;;  %v1666_v49 = vcombine.low %v2835_v5, %v2246_v7  ;;  %v1669_v50 = vcombine.high %v2251_v8, %v2261_v10 }
  0x58   : >> { %682 = vmatprep.subr.bf16.mxu0 %v1652_v51  ;;  %725 = vmatprep.subr.bf16.mxu1 %v1654_v52  ;;  %v1671_v51 = vcombine.high %v2256_v9, %v2266_v11  ;;  %v1668_v52 = vcombine.low %v2251_v8, %v2261_v10 }
  0x5b   : >> { %683 = vmatpush1.bf16.msra.mxu0 %v1651_v53  ;;  %726 = vmatpush1.bf16.msra.mxu1 %v1653_v54  ;;  %v1670_v53 = vcombine.low %v2256_v9, %v2266_v11  ;;  %v1898_v54 = vld [vmem:[%s2477_s20] sm:$0xff]  }
  0x5c   : >> { %684 = vmatprep.subr.bf16.mxu0 %v1656_v55  ;;  %727 = vmatprep.subr.bf16.mxu1 %v1658_v56  ;;  %v894_v55 = vlaneseq }
  0x5e   : >> { %v2550_v56 = vshrl.u32 %v894_v55, 7 }
  0x5f   : >> { %685 = vmatpush1.bf16.msra.mxu0 %v1655_v57  ;;  %728 = vmatpush1.bf16.msra.mxu1 %v1657_v58 }
  0x60   : >> { %686 = vmatprep.subr.bf16.mxu0 %v1660_v60  ;;  %729 = vmatprep.subr.bf16.mxu1 %v1662_v61  ;;  %v2823_v57 = vsub.s32 0, %v2550_v56  ;;  %v900_v58 = vsub.s32 1, %v2550_v56  ;;  %v2825_v61 = vsub.s32 2, %v2550_v56 }
  0x62   : >> { %v897_v60 = vrot.slane %v2431_v44, %v2823_v57 }
  0x63   : >> { %687 = vmatpush1.bf16.msra.mxu0 %v1659_v62  ;;  %730 = vmatpush1.bf16.msra.mxu1 %v1661_v63 }
  0x64   : >> { %807 = vmatprep.subr.bf16.mxu0 %v1665_v0  ;;  %850 = vmatprep.subr.bf16.mxu1 %v1667_v1  ;;  %v905_v1 = vrot.slane %v2431_v44, %v2825_v61 }
  0x66   : >> { %705 = vmatmul.mubr.bf16.vlgmr.msra.gmra.mrb[0].mxu0 %v511_v2  ;;  %748 = vmatmul.mubr.bf16.vlgmr.msra.gmra.mrb[0].mxu1 %v511_v2 }
  0x67   : >> { %808 = vmatpush1.bf16.msra.mxu0 %v1664_v3  ;;  %851 = vmatpush1.bf16.msra.mxu1 %v1666_v49  ;;  %v2828_v49 = vsub.s32 3, %v2550_v56 }
  0x68   : >> { %809 = vmatprep.subr.bf16.mxu0 %v1669_v50  ;;  %852 = vmatprep.subr.bf16.mxu1 %v1671_v51 }
  0x69   : >> { %839 = vmatprep.mubr.bf16.mxu0 %v2096_v59  ;;  %882 = vmatprep.mubr.bf16.mxu1 %v2096_v59  ;;  %v901_v59 = vrot.slane %v2431_v44, %v900_v58  ;;  %v909_v61 = vrot.slane %v2431_v44, %v2828_v49 }
  0x6b   : >> { %810 = vmatpush1.bf16.msra.mxu0 %v1668_v52  ;;  %853 = vmatpush1.bf16.msra.mxu1 %v1670_v53 }
  0x72   : >> { %1672 = vmatmul.mubr.msk.bf16.vlgmr.msra.gmra.mrb[0].mxu0 %vm803_vm0, %v1898_v54  ;;  %1673 = vmatmul.mubr.msk.bf16.vlgmr.msra.gmra.mrb[0].mxu1 %vm803_vm0, %v1898_v54 }
 0x145   : >> { %v841_v62 = vpop.f32.mrb[0].mxu0  ;;  %v884_v63 = vpop.f32.mrb[0].mxu1 }
 0x146   : >> { %v914_v0 = vadd.f32 %v897_v60, %v841_v62  ;;  %v843_v2 = vpop.f32.mrb[1].mxu0  ;;  %v886_v3 = vpop.f32.mrb[1].mxu1  ;;  %v916_v62 = vadd.f32 %v905_v1, %v884_v63 }
 0x147   : >> { %v915_v50 = vadd.f32 %v901_v59, %v843_v2  ;;  %v845_v51 = vpop.f32.mrb[2].mxu0  ;;  %v888_v52 = vpop.f32.mrb[2].mxu1 }
 0x148   : >> { %v932_v53 = vmul.f32 0.5, %v914_v0  ;;  %v918_v54 = vadd.f32 %v897_v60, %v845_v51  ;;  %v847_v55 = vpop.f32.mrb[3].mxu0  ;;  %v890_v58 = vpop.f32.mrb[3].mxu1  ;;  %v920_v2 = vadd.f32 %v905_v1, %v888_v52  ;;  %v917_v0 = vadd.f32 %v909_v61, %v886_v3 }
 0x149   : >> { %v922_v57 = vmul.f32 0.5, %v915_v50  ;;  %v919_v4 = vadd.f32 %v901_v59, %v847_v55  ;;  %v921_v50 = vadd.f32 %v909_v61, %v890_v58 }
 0x14a   : >> { %1899 = vtanh.f32 %v932_v53  ;;  %v933_v5 = vmul.f32 0.5, %v918_v54  ;;  %v946_v60 = vmul.f32 0.5, %v917_v0 }
 0x14b   : >> { %1901 = vtanh.f32 %v922_v57  ;;  %v923_v6 = vmul.f32 0.5, %v919_v4  ;;  %v947_v55 = vmul.f32 0.5, %v921_v50 }
 0x14c   : >> { %1903 = vtanh.f32 %v933_v5  ;;  %v962_v5 = vstv %s961_s28 }
 0x14d   : >> { %1905 = vtanh.f32 %v916_v62  ;;  %vm2569_vm1 = vcmp.eq.s32.totalorder %v962_v5, 1 }
 0x14e   : >> { %1907 = vtanh.f32 %v923_v6 }
 0x14f   : >> { %1909 = vtanh.f32 %v920_v2 }
 0x150   : >> { %1911 = vtanh.f32 %v946_v60 }
 0x151   : >> { %1913 = vtanh.f32 %v947_v55 }
 0x154   : >> { %v1900_v59 = vpop.eup %1899 }
 0x155   : >> { %v1902_v63 = vpop.eup %1901  ;;  %v936_v51 = vmul.f32 0.5, %v1900_v59 }
 0x156   : >> { %v926_v53 = vmul.f32 0.5, %v1902_v63  ;;  %v1904_v54 = vpop.eup %1903 }
 0x157   : >> { %v938_v57 = vadd.f32 0.5, %v936_v51  ;;  %v1906_v4 = vpop.eup %1905  ;;  %v937_v1 = vmul.f32 0.5, %v1904_v54 }
 0x158   : >> { %v928_v49 = vadd.f32 0.5, %v926_v53  ;;  %v1908_v52 = vpop.eup %1907 }
 0x159   : >> { %v942_v3 = vmul.f32 %v1906_v4, %v938_v57  ;;  %v939_v62 = vadd.f32 0.5, %v937_v1  ;;  %v927_v2 = vmul.f32 0.5, %v1908_v52  ;;  %v1910_v61 = vpop.eup %1909 }
 0x15a   : >> { %v930_v6 = vmul.f32 %v2081_v47, %v928_v49  ;;  %v1912_v51 = vpop.eup %1911 }
 0x15b   : >> { %v929_v60 = vadd.f32 0.5, %v927_v2  ;;  %v943_v50 = vmul.f32 %v1910_v61, %v939_v62  ;;  %v950_v55 = vmul.f32 0.5, %v1912_v51  ;;  %v1914_v54 = vpop.eup %1913 }
 0x15c   : >> { %v944_v0 = vadd.f32 %v942_v3, %v930_v6  ;;  %v951_v4 = vmul.f32 0.5, %v1914_v54 }
 0x15d   : >> { %v931_v63 = vmul.f32 %v2077_v48, %v929_v60  ;;  %v952_v57 = vadd.f32 0.5, %v950_v55 }
 0x15e   : >> { %1915 = vtanh.f32 %v944_v0  ;;  %v966_v59 = vsel %vm2569_vm1, %v944_v0, %v2081_v47   ;;  %v953_v47 = vadd.f32 0.5, %v951_v4 }
 0x15f   : >> { %v945_v49 = vadd.f32 %v943_v50, %v931_v63  ;;  %970 = vst [vmem:[#allocation3] sm:$0xff] (%p498_p13), %v966_v59 }
 0x161   : >> { %1917 = vtanh.f32 %v945_v49  ;;  %v967_v53 = vsel %vm2569_vm1, %v945_v49, %v2077_v48  }
 0x162   : >> { %v2841_v48 = vmov %v967_v53  ;;  %971 = vst [vmem:[#allocation3 + $0x8] sm:$0xff] (%p498_p13), %v967_v53 }
 0x168   : >> { %v1916_v5 = vpop.eup %1915 }
 0x169   : >> { %v956_v1 = vmul.f32 %v1916_v5, %v952_v57 }
 0x16a   : > { %500 = sbr.rel (!%p498_p13) target bundleno = 68 (0x44), region = 152 }
 0x16b   : >> { %v2583_v45 = vsel %vm2569_vm1, %v956_v1, %v2089_v45   ;;  %v1918_v3 = vpop.eup %1917 }
 0x16c   : >> { %v2839_v52 = vmov %v2583_v45  ;;  %v957_v6 = vmul.f32 %v1918_v3, %v953_v47  ;;  %v2842_v47 = vmov %v966_v59 }
 0x16d   : >> { %v2844_v45 = vmov %v2839_v52  ;;  %968 = vst [vmem:[#allocation2] sm:$0xff] (%p498_p13), %v2839_v52 }
 0x16e   : >> { %v2588_v46 = vsel %vm2569_vm1, %v957_v6, %v2085_v46  }
 0x16f   : >> { %v2840_v62 = vmov %v2588_v46 }
 0x170   : >> { %v2843_v46 = vmov %v2840_v62  ;;  %969 = vst [vmem:[#allocation2 + $0x8] sm:$0xff] (%p498_p13), %v2840_v62 }
 0x171   : > { %975 = sbr.rel (%p1674_p0) target bundleno = 1087 (0x43f), region = 116  ;;  %v1919_v45 = vld [vmem:[%s2814_s4] sm:$0xff] (!%p1674_p0)   ;;  %v2097_v2 = vmov (!%p1674_p0), 0.0   ;;  %v1920_v7 = vld [vmem:[%s2814_s4 + $0x8] sm:$0xff] (!%p1674_p0)   ;;  %vm2098_vm2 = vmmov (!%p1674_p0), 0   ;;  %v1921_v8 = vld [vmem:[%s2814_s4 + $0x10] sm:$0xff] (!%p1674_p0)   ;;  %v976_v29 = vpack.c.bf16 (!%p1674_p0), %v2840_v62, %v2839_v52 }
 0x172   : > { %1747 = vmatprep.subr.bf16.mxu0 (!%p1674_p0), %v2097_v2  ;;  %1763 = vmatprep.mubr.msk.bf16.mxu0 (!%p1674_p0), %vm2098_vm2, %v2097_v2  ;;  %v1927_v9 = vld [vmem:[%s2816_s6 + $0x4] ss:$16 sps:$4 sm:$0xff] (!%p1674_p0)   ;;  %v1922_v10 = vld [vmem:[%s2814_s4 + $0x18] sm:$0xff] (!%p1674_p0)   ;;  %v1932_v11 = vld [vmem:[%s2816_s6] ss:$16 sps:$4 sm:$0xff] (!%p1674_p0)   ;;  %v2099_v61 = vmov (!%p1674_p0), 0  }
 0x173   : > { %1748 = vmatpush3.bf16.msra.mxu0 (!%p1674_p0), %v1919_v45  ;;  %1299 = vmatprep.subr.bf16.mxu1 (!%p1674_p0), %v1927_v9  ;;  %v1933_v12 = vld [vmem:[%s2816_s6 + $0x24] ss:$16 sps:$4 sm:$0xff] (!%p1674_p0)   ;;  %v1938_v14 = vld [vmem:[%s2816_s6 + $0x20] ss:$16 sps:$4 sm:$0xff] (!%p1674_p0)   ;;  %v1924_v18 = vld [vmem:[%s2814_s4 + $0x28] sm:$0xff] (!%p1674_p0)   ;;  %v2845_v3 = vsub.s32 (!%p1674_p0), 0, %v2550_v56 }
 0x174   : > { %1749 = vmatprep.subr.bf16.mxu0 (!%p1674_p0), %v2097_v2  ;;  %v1923_v13 = vld [vmem:[%s2814_s4 + $0x20] sm:$0xff] (!%p1674_p0)   ;;  %1300 = vmatpush1.bf16.msra.mxu1 (!%p1674_p0), %v1932_v11  ;;  %v1925_v21 = vld [vmem:[%s2814_s4 + $0x30] sm:$0xff] (!%p1674_p0)   ;;  %v1926_v22 = vld [vmem:[%s2814_s4 + $0x38] sm:$0xff] (!%p1674_p0)  }
 0x175   : > { %1301 = vmatprep.subr.bf16.mxu1 (!%p1674_p0), %v1933_v12  ;;  %v1939_v15 = vld [vmem:[%s2816_s6 + $0x44] ss:$16 sps:$4 sm:$0xff] (!%p1674_p0)   ;;  %v1944_v16 = vld [vmem:[%s2816_s6 + $0x40] ss:$16 sps:$4 sm:$0xff] (!%p1674_p0)   ;;  %v1931_v25 = vld [vmem:[%s2816_s6 + $0xc] ss:$16 sps:$4 sm:$0xff] (!%p1674_p0)   ;;  %1331 = vmatprep.mubr.bf16.mxu1 (!%p1674_p0), %v2099_v61 }
 0x176   : > { %v1945_v17 = vld [vmem:[%s2816_s6 + $0x64] ss:$16 sps:$4 sm:$0xff] (!%p1674_p0)   ;;  %v1950_v19 = vld [vmem:[%s2816_s6 + $0x60] ss:$16 sps:$4 sm:$0xff] (!%p1674_p0)   ;;  %v1929_v28 = vld [vmem:[%s2816_s6 + $0x8] ss:$16 sps:$4 sm:$0xff] (!%p1674_p0)  }
 0x177   : > { %1750 = vmatpush3.bf16.msra.mxu0 (!%p1674_p0), %v1920_v7  ;;  %v1951_v20 = vld [vmem:[%s2816_s6 + $0x84] ss:$16 sps:$4 sm:$0xff] (!%p1674_p0)   ;;  %v1956_v23 = vld [vmem:[%s2816_s6 + $0x80] ss:$16 sps:$4 sm:$0xff] (!%p1674_p0)   ;;  %v1937_v30 = vld [vmem:[%s2816_s6 + $0x2c] ss:$16 sps:$4 sm:$0xff] (!%p1674_p0)  }
 0x178   : > { %1751 = vmatprep.subr.bf16.mxu0 %v2097_v2  ;;  %1302 = vmatpush1.bf16.msra.mxu1 %v1938_v14  ;;  %v1957_v24 = vld [vmem:[%s2816_s6 + $0xa4] ss:$16 sps:$4 sm:$0xff]   ;;  %v1962_v26 = vld [vmem:[%s2816_s6 + $0xa0] ss:$16 sps:$4 sm:$0xff]   ;;  %v1935_v31 = vld [vmem:[%s2816_s6 + $0x28] ss:$16 sps:$4 sm:$0xff]  }
 0x179   : > { %1303 = vmatprep.subr.bf16.mxu1 %v1939_v15  ;;  %v1963_v27 = vld [vmem:[%s2816_s6 + $0xc4] ss:$16 sps:$4 sm:$0xff]   ;;  %v1943_v32 = vld [vmem:[%s2816_s6 + $0x4c] ss:$16 sps:$4 sm:$0xff]   ;;  %v1941_v33 = vld [vmem:[%s2816_s6 + $0x48] ss:$16 sps:$4 sm:$0xff]  }
 0x17a   : > { %v1949_v34 = vld [vmem:[%s2816_s6 + $0x6c] ss:$16 sps:$4 sm:$0xff]   ;;  %v1947_v35 = vld [vmem:[%s2816_s6 + $0x68] ss:$16 sps:$4 sm:$0xff]   ;;  %v1968_v42 = vld [vmem:[%s2816_s6 + $0xc0] ss:$16 sps:$4 sm:$0xff]  }
 0x17b   : > { %1752 = vmatpush3.bf16.msra.mxu0 %v1921_v8  ;;  %v1955_v36 = vld [vmem:[%s2816_s6 + $0x8c] ss:$16 sps:$4 sm:$0xff]   ;;  %v1953_v37 = vld [vmem:[%s2816_s6 + $0x88] ss:$16 sps:$4 sm:$0xff]   ;;  %v1969_v43 = vld [vmem:[%s2816_s6 + $0xe4] ss:$16 sps:$4 sm:$0xff]  }
 0x17c   : > { %1753 = vmatprep.subr.bf16.mxu0 %v2097_v2  ;;  %1304 = vmatpush1.bf16.msra.mxu1 %v1944_v16  ;;  %v1961_v38 = vld [vmem:[%s2816_s6 + $0xac] ss:$16 sps:$4 sm:$0xff]   ;;  %v1959_v39 = vld [vmem:[%s2816_s6 + $0xa8] ss:$16 sps:$4 sm:$0xff]   ;;  %v1974_v48 = vld [vmem:[%s2816_s6 + $0xe0] ss:$16 sps:$4 sm:$0xff]  }
 0x17d   : > { %1305 = vmatprep.subr.bf16.mxu1 %v1945_v17  ;;  %v1967_v40 = vld [vmem:[%s2816_s6 + $0xcc] ss:$16 sps:$4 sm:$0xff]   ;;  %v1965_v41 = vld [vmem:[%s2816_s6 + $0xc8] ss:$16 sps:$4 sm:$0xff]   ;;  %v1675_v58 = vld [vmem:[%s2815_s5] ss:$0 sm:$0xff] }
 0x17e   : > { %v1973_v44 = vld [vmem:[%s2816_s6 + $0xec] ss:$16 sps:$4 sm:$0xff]   ;;  %v1971_v46 = vld [vmem:[%s2816_s6 + $0xe8] ss:$16 sps:$4 sm:$0xff]   ;;  %v1975_v53 = vld [vmem:[%s2818_s8] sm:$0xff]   ;;  %v2846_v8 = vsub.s32 2, %v2550_v56 }
 0x17f   : > { %1754 = vmatpush3.bf16.msra.mxu0 %v1922_v10  ;;  %v1976_v55 = vld [vmem:[%s2818_s8 + $0x8] sm:$0xff]   ;;  %v1977_v54 = vld [vmem:[%s2818_s8 + $0x10] sm:$0xff]   ;;  %v1978_v57 = vld [vmem:[%s2818_s8 + $0x18] sm:$0xff]   ;;  %v2847_v12 = vsub.s32 3, %v2550_v56 }
 0x180   : > { %1755 = vmatprep.subr.bf16.mxu0 %v2097_v2  ;;  %1306 = vmatpush1.bf16.msra.mxu1 %v1950_v19  ;;  %v1979_v4 = vld [vmem:[%s2818_s8 + $0x20] sm:$0xff]   ;;  %v1980_v5 = vld [vmem:[%s2818_s8 + $0x28] sm:$0xff]   ;;  %v1981_v1 = vld [vmem:[%s2818_s8 + $0x30] sm:$0xff]  }
 0x181   : > { %1307 = vmatprep.subr.bf16.mxu1 %v1951_v20  ;;  %v1982_v52 = vld [vmem:[%s2818_s8 + $0x38] sm:$0xff]   ;;  %v1122_v47 = vld [vmem:[%s2817_s7] sm:$0xf] }
 0x182   : > { %v1127_v6 = vrot.slane %v1122_v47, %v2845_v3  ;;  %v1131_v9 = vrot.slane %v1122_v47, %v2846_v8 }
 0x183   : > { %1756 = vmatpush3.bf16.msra.mxu0 %v1923_v13  ;;  %v1135_v13 = vrot.slane %v1122_v47, %v2847_v12 }
 0x184   : > { %1757 = vmatprep.subr.bf16.mxu0 %v2097_v2  ;;  %1308 = vmatpush1.bf16.msra.mxu1 %v1956_v23 }
 0x185   : > { %1309 = vmatprep.subr.bf16.mxu1 %v1957_v24 }
 0x187   : > { %1758 = vmatpush3.bf16.msra.mxu0 %v1924_v18 }
 0x188   : > { %1759 = vmatprep.subr.bf16.mxu0 %v2097_v2  ;;  %1310 = vmatpush1.bf16.msra.mxu1 %v1962_v26 }
 0x189   : > { %1311 = vmatprep.subr.bf16.mxu1 %v1963_v27 }
 0x18b   : > { %1760 = vmatpush3.bf16.msra.mxu0 %v1925_v21 }
 0x18c   : > { %1761 = vmatprep.subr.bf16.mxu0 %v2097_v2  ;;  %1312 = vmatpush1.bf16.msra.mxu1 %v1968_v42 }
 0x18d   : > { %1313 = vmatprep.subr.bf16.mxu1 %v1969_v43 }
 0x18f   : > { %1762 = vmatpush3.bf16.msra.mxu0 %v1926_v22 }
 0x190   : > { %1340 = vmatprep.subr.bf16.mxu0 %v1931_v25  ;;  %1314 = vmatpush1.bf16.msra.mxu1 %v1974_v48  ;;  %v1716_v48 = vld [vmem:[%s2819_s9] ss:$0 sm:$0xff] }
 0x191   : > { %1767 = vmatprep.subr.bf16.mxu1 %v2097_v2 }
 0x192   : > { %1764 = vmatmul.mubr.bf16.vlgmr.msra.gmra.mrb[0].mxu0 %v976_v29 }
 0x193   : > { %1341 = vmatpush1.bf16.msra.mxu0 %v1929_v28  ;;  %1372 = vmatprep.mubr.bf16.mxu0 %v2099_v61 }
 0x194   : > { %1342 = vmatprep.subr.bf16.mxu0 %v1937_v30 }
 0x197   : > { %1343 = vmatpush1.bf16.msra.mxu0 %v1935_v31 }
 0x198   : > { %1344 = vmatprep.subr.bf16.mxu0 %v1943_v32 }
 0x19b   : > { %1345 = vmatpush1.bf16.msra.mxu0 %v1941_v33 }
 0x19c   : > { %1346 = vmatprep.subr.bf16.mxu0 %v1949_v34 }
 0x19f   : > { %1347 = vmatpush1.bf16.msra.mxu0 %v1947_v35 }
 0x1a0   : > { %1348 = vmatprep.subr.bf16.mxu0 %v1955_v36 }
 0x1a3   : > { %1349 = vmatpush1.bf16.msra.mxu0 %v1953_v37 }
 0x1a4   : > { %1350 = vmatprep.subr.bf16.mxu0 %v1961_v38 }
 0x1a7   : > { %1351 = vmatpush1.bf16.msra.mxu0 %v1959_v39 }
 0x1a8   : > { %1352 = vmatprep.subr.bf16.mxu0 %v1967_v40 }
 0x1ab   : > { %1353 = vmatpush1.bf16.msra.mxu0 %v1965_v41 }
 0x1ac   : > { %1354 = vmatprep.subr.bf16.mxu0 %v1973_v44 }
 0x1af   : > { %1355 = vmatpush1.bf16.msra.mxu0 %v1971_v46 }
 0x265   : > { %v1082_v0 = vpop.f32.mrb[0].mxu0 }
 0x266   : > { %v1765_v60 = vpop.f32.mrb[1].mxu0  ;;  %v1083_v59 = vadd.f32 %v1675_v58, %v1082_v0 }
 0x267   : > { %v1085_v50 = vpop.f32.mrb[2].mxu0 }
 0x268   : > { %v1086_v63 = vadd.f32 %v1675_v58, %v1085_v50  ;;  %v1766_v51 = vpop.f32.mrb[3].mxu0 }
 0x26a   : > { %v1089_v49 = vpack.c.bf16 %v1086_v63, %v1083_v59 }
 0x26c   : > { %1332 = vmatmul.mubr.bf16.vlgmr.msra.gmra.mrb[0].mxu1 %v1089_v49  ;;  %1373 = vmatmul.mubr.bf16.vlgmr.msra.gmra.mrb[4].mxu0 %v1089_v49 }
 0x26d   : > { %1783 = vmatprep.mubr.msk.bf16.mxu1 %vm2098_vm2, %v2097_v2  ;;  %1768 = vmatpush3.bf16.msra.mxu1 %v1975_v53 }
 0x26e   : > { %1769 = vmatprep.subr.bf16.mxu1 %v2097_v2 }
 0x271   : > { %1770 = vmatpush3.bf16.msra.mxu1 %v1976_v55 }
 0x272   : > { %1771 = vmatprep.subr.bf16.mxu1 %v2097_v2 }
 0x275   : > { %1772 = vmatpush3.bf16.msra.mxu1 %v1977_v54 }
 0x276   : > { %1773 = vmatprep.subr.bf16.mxu1 %v2097_v2 }
 0x279   : > { %1774 = vmatpush3.bf16.msra.mxu1 %v1978_v57 }
 0x27a   : > { %1775 = vmatprep.subr.bf16.mxu1 %v2097_v2 }
 0x27d   : > { %1776 = vmatpush3.bf16.msra.mxu1 %v1979_v4 }
 0x27e   : > { %1777 = vmatprep.subr.bf16.mxu1 %v2097_v2 }
 0x281   : > { %1778 = vmatpush3.bf16.msra.mxu1 %v1980_v5 }
 0x282   : > { %1779 = vmatprep.subr.bf16.mxu1 %v2097_v2 }
 0x285   : > { %1780 = vmatpush3.bf16.msra.mxu1 %v1981_v1 }
 0x286   : > { %1781 = vmatprep.subr.bf16.mxu1 %v2097_v2 }
 0x289   : > { %1782 = vmatpush3.bf16.msra.mxu1 %v1982_v52 }
 0x33f   : > { %v1333_v62 = vpop.f32.mrb[0].mxu1  ;;  %v1374_v45 = vpop.f32.mrb[4].mxu0 }
 0x340   : > { %v1334_v7 = vadd.f32 %v1333_v62, %v1127_v6  ;;  %v1335_v10 = vpop.f32.mrb[1].mxu1  ;;  %v1376_v11 = vpop.f32.mrb[5].mxu0  ;;  %v1375_v19 = vadd.f32 %v1374_v45, %v1131_v9 }
 0x341   : > { %v1336_v2 = vpop.f32.mrb[2].mxu1  ;;  %v1378_v14 = vpop.f32.mrb[6].mxu0  ;;  %v1377_v21 = vadd.f32 %v1376_v11, %v1135_v13 }
 0x342   : > { %v1383_v15 = vmul.f32 0.5, %v1334_v7  ;;  %v1337_v16 = vadd.f32 %v1336_v2, %v1127_v6  ;;  %v1338_v17 = vpop.f32.mrb[3].mxu1  ;;  %v1380_v18 = vpop.f32.mrb[7].mxu0  ;;  %v1379_v22 = vadd.f32 %v1378_v14, %v1131_v9 }
 0x343   : > { %v1381_v23 = vadd.f32 %v1380_v18, %v1135_v13  ;;  %v1393_v24 = vmul.f32 0.5, %v1377_v21 }
 0x344   : > { %1983 = vtanh.f32 %v1383_v15  ;;  %v1384_v20 = vmul.f32 0.5, %v1337_v16 }
 0x345   : > { %v1394_v25 = vmul.f32 0.5, %v1381_v23 }
 0x346   : > { %1985 = vtanh.f32 %v1384_v20 }
 0x347   : > { %1987 = vtanh.f32 %v1375_v19 }
 0x348   : > { %1989 = vtanh.f32 %v1379_v22 }
 0x349   : > { %1991 = vtanh.f32 %v1393_v24 }
 0x34a   : > { %1993 = vtanh.f32 %v1394_v25 }
 0x34e   : > { %v1984_v56 = vpop.eup %1983 }
 0x34f   : > { %v1387_v26 = vmul.f32 0.5, %v1984_v56 }
 0x350   : > { %v1986_v27 = vpop.eup %1985 }
 0x351   : > { %v1389_v28 = vadd.f32 0.5, %v1387_v26  ;;  %v1388_v29 = vmul.f32 0.5, %v1986_v27  ;;  %v1988_v30 = vpop.eup %1987 }
 0x352   : > { %v1990_v33 = vpop.eup %1989 }
 0x353   : > { %v1401_v31 = vmul.f32 %v1988_v30, %v1389_v28  ;;  %v1390_v32 = vadd.f32 0.5, %v1388_v29  ;;  %v1992_v35 = vpop.eup %1991 }
 0x354   : > { %v1994_v36 = vpop.eup %1993  ;;  %v1397_v37 = vmul.f32 0.5, %v1992_v35 }
 0x355   : > { %1995 = vtanh.f32 %v1401_v31  ;;  %v1402_v34 = vmul.f32 %v1990_v33, %v1390_v32  ;;  %v1398_v38 = vmul.f32 0.5, %v1994_v36 }
 0x356   : > { %v1399_v39 = vadd.f32 0.5, %v1397_v37 }
 0x357   : > { %1997 = vtanh.f32 %v1402_v34  ;;  %v1400_v42 = vadd.f32 0.5, %v1398_v38 }
 0x35f   : > { %v1996_v40 = vpop.eup %1995 }
 0x360   : > { %v1405_v41 = vmul.f32 %v1996_v40, %v1399_v39 }
 0x361   : > { %v1998_v43 = vpop.eup %1997 }
 0x362   : > { %v1406_v44 = vmul.f32 %v1998_v43, %v1400_v42 }
 0x364   : > { %v1407_v46 = vpack.c.bf16 %v1406_v44, %v1405_v41 }
 0x366   : > { %1784 = vmatmul.mubr.bf16.vlgmr.msra.gmra.mrb[4].mxu1 %v1407_v46 }
 0x439   : > { %v1513_v61 = vpop.f32.mrb[4].mxu1 }
 0x43a   : > { %v1514_v58 = vadd.f32 %v1716_v48, %v1513_v61  ;;  %v1785_v0 = vpop.f32.mrb[5].mxu1 }
 0x43b   : > { %v1516_v60 = vpop.f32.mrb[6].mxu1 }
 0x43c   : > { %1520 = vst [vmem:[%s2224_s29] sm:$0xff] %v1514_v58  ;;  %v1517_v50 = vadd.f32 %v1716_v48, %v1516_v60  ;;  %v1786_v59 = vpop.f32.mrb[7].mxu1 }
 0x43e   : > { %1521 = vst [vmem:[%s2224_s29 + $0x8] sm:$0xff] %v1517_v50 }
 0x43f PF: > { %s20_s19 = sadd.s32 1, %s2073_s19   ;;  %s2848_s21 = sld [smem:[#allocation5_spill]] }
 0x440   : > { %p17_p1 = scmp.ge.s32.totalorder %s20_s19, 8   ;;  %s2849_s30 = sld [smem:[#allocation6_spill]] }
 0x441   : > { %s2850_s13 = smov %s2053_s14  ;;  %s2851_s14 = smov %s2206_s26 }
 0x442   : > { %s2852_s15 = smov %s2065_s17  ;;  %s2853_s16 = smov %s2069_s18 }
 0x443   :  { %19 = sbr.rel (!%p17_p1) target bundleno = 4 (0x4), region = 163 }
 0x445   : > { %s2854_s17 = smov %s2848_s21 }
 0x446   : > { %s2855_s18 = smov %s2849_s30 }

</bundles_post_ra>
